<compile_context>
chip_gen: v6e
topology: v6e:2x2x1
jax: 0.10.0
libtpu: 0.0.40
codegen_flags: <defaults>
</compile_context>

<pallas_src>
import jax
import jax.numpy as jnp
from jax.experimental import pallas as pl
from jax.experimental.pallas import tpu as pltpu

SUBLANE = 8


def _round_up(n, m):
    return ((n + m - 1) // m) * m


def _autocoder_kernel(x_ref, w_ref, b_ref, o_ref):
    # (TB, D_in) @ (D_in, D_out) on the MXU, f32 accumulation.
    x = x_ref[...].astype(jnp.bfloat16)
    h = jnp.dot(x, w_ref[...], preferred_element_type=jnp.float32) + b_ref[...]
    # sigmoid: exp -> EUP, approx reciprocal -> EUP (keeps VALU free).
    o_ref[...] = pl.reciprocal(1.0 + jnp.exp(-h), approx=True).astype(o_ref.dtype)


def prepare_params(params):
    """One-time prep (off the hot path).

    Since there is no nonlinearity between the layers, fold all three linears
    into a single affine map in f32, then cast the fused weight to bf16 for
    the MXU.  Weights are PyTorch nn.Linear convention: (out, in)."""
    w1, b1 = params["w1"], params["b1"]   # (hidden, in),    (hidden,)
    w2, b2 = params["w2"], params["b2"]   # (latent, hidden), (latent,)
    w3, b3 = params["w3"], params["b3"]   # (out, latent),   (out,)

    w_fused = w1.T @ w2.T @ w3.T                      # (in, out), f32
    b_fused = b1 @ w2.T @ w3.T + b2 @ w3.T + b3       # (out,),   f32

    return {
        "w": w_fused.astype(jnp.bfloat16),
        "b": b_fused.reshape(1, -1).astype(jnp.float32),
    }


def autocoder_forward(x, prepped):
    """x: (batch, in_dim) float32.  prepped: output of prepare_params."""
    w, b = prepped["w"], prepped["b"]
    batch, in_dim = x.shape
    out_dim = w.shape[1]

    # Batch tiling: big tiles to amortize per-step overhead, but always at
    # least 2 tiles when the batch allows (v7x megacore occupancy), and never
    # below the 8-row sublane granule.
    if batch >= 4096:
        tile_b = 2048
    elif batch >= 2048:
        tile_b = 1024
    elif batch >= 1024:
        tile_b = 512
    elif batch >= 2 * SUBLANE:
        tile_b = _round_up((batch + 1) // 2, SUBLANE)   # two tiles
    else:
        tile_b = SUBLANE
    n_tiles = pl.cdiv(batch, tile_b)    # ragged last tile is masked on store

    flops = 2 * batch * in_dim * out_dim
    bytes_accessed = (batch * in_dim * 4      # x read
                      + w.size * 2            # bf16 fused weight
                      + b.size * 4            # f32 bias
                      + batch * out_dim * 4)  # f32 output

    out = pl.pallas_call(
        _autocoder_kernel,
        out_shape=jax.ShapeDtypeStruct((batch, out_dim), jnp.float32),
        grid=(n_tiles,),
        in_specs=[
            pl.BlockSpec((tile_b, in_dim), lambda i: (i, 0)),   # x tile (streamed)
            pl.BlockSpec((in_dim, out_dim), lambda i: (0, 0)),  # fused W (resident)
            pl.BlockSpec((1, out_dim), lambda i: (0, 0)),       # fused b (resident)
        ],
        out_specs=pl.BlockSpec((tile_b, out_dim), lambda i: (i, 0)),
        compiler_params=pltpu.CompilerParams(
            dimension_semantics=("parallel",)),
        cost_estimate=pl.CostEstimate(
            flops=flops,
            transcendentals=batch * out_dim,
            bytes_accessed=bytes_accessed),
    )(x, w, b)

    return out


def init_params(key, input_dim, hidden_dim, latent_dim):
    """PyTorch nn.Linear convention: weight (out, in), bias (out,)."""
    ks = jax.random.split(key, 6)

    def lin(kw, kb, fan_in, fan_out):
        bound = 1.0 / jnp.sqrt(fan_in)
        w = jax.random.uniform(kw, (fan_out, fan_in), jnp.float32, -bound, bound)
        b = jax.random.uniform(kb, (fan_out,), jnp.float32, -bound, bound)
        return w, b

    w1, b1 = lin(ks[0], ks[1], input_dim, hidden_dim)    # encoder layer 1
    w2, b2 = lin(ks[2], ks[3], hidden_dim, latent_dim)   # encoder layer 2
    w3, b3 = lin(ks[4], ks[5], latent_dim, input_dim)    # decoder layer
    return {"w1": w1, "b1": b1, "w2": w2, "b2": b2, "w3": w3, "b3": b3}


def reference_forward(x, p):
    h = x @ p["w1"].T + p["b1"]
    h = h @ p["w2"].T + p["b2"]
    h = h @ p["w3"].T + p["b3"]
    return jax.nn.sigmoid(h)


if __name__ == "__main__":
    key = jax.random.PRNGKey(0)
    kx, kp = jax.random.split(key)

    batch, input_dim, hidden_dim, latent_dim = 64, 32, 32, 16
    x = jax.random.normal(kx, (batch, input_dim), jnp.float32)
    params = init_params(kp, input_dim, hidden_dim, latent_dim)

    prepped = prepare_params(params)          # one-time prep, off the hot path
    out = jax.block_until_ready(autocoder_forward(x, prepped))

    ref = reference_forward(x, params)
    assert out.shape == (batch, input_dim), out.shape
    max_err = float(jnp.max(jnp.abs(out - ref)))
    assert max_err < 2e-2, f"mismatch vs reference: max abs err {max_err}"
    print("KERNEL_OK")
</pallas_src>

<mosaic_0001>
module attributes {stable_mosaic.version = 11 : i64} {
  func.func @_autocoder_kernel(%arg0: i32, %arg1: memref<32x32xf32, #tpu.memory_space<vmem>>, %arg2: memref<32x32xbf16, #tpu.memory_space<vmem>>, %arg3: memref<1x32xf32, #tpu.memory_space<vmem>>, %arg4: memref<32x32xf32, #tpu.memory_space<vmem>>) attributes {dimension_semantics = [#tpu.dimension_semantics<parallel>], iteration_bounds = array<i64: 2>, scalar_prefetch = 0 : i64, scratch_operands = 0 : i64, tpu.core_type = #tpu.core_type<tc>, window_params = [{transform_indices = @transform_0, window_bounds = array<i64: 32, 32>}, {pipeline_mode = #tpu.pipeline_mode<synchronous>, transform_indices = @transform_1, window_bounds = array<i64: 32, 32>}, {pipeline_mode = #tpu.pipeline_mode<synchronous>, transform_indices = @transform_2, window_bounds = array<i64: 1, 32>}, {transform_indices = @transform_3, window_bounds = array<i64: 32, 32>}]} {
    %c0 = arith.constant 0 : index
    %c0_0 = arith.constant 0 : index
    %0 = vector.load %arg1[%c0, %c0_0] : memref<32x32xf32, #tpu.memory_space<vmem>>, vector<32x32xf32>
    %1 = arith.truncf %0 : vector<32x32xf32> to vector<32x32xbf16>
    %c0_1 = arith.constant 0 : index
    %c0_2 = arith.constant 0 : index
    %2 = vector.load %arg2[%c0_1, %c0_2] : memref<32x32xbf16, #tpu.memory_space<vmem>>, vector<32x32xbf16>
    %cst = arith.constant dense<0.000000e+00> : vector<32x32xf32>
    %3 = tpu.matmul %1, %2, %cst {dimension_numbers = #tpu.dot_dimension_numbers<[1], [0], [0], [1], [0, 0, 1, 1], [], []>} : vector<32x32xbf16>, vector<32x32xbf16>, vector<32x32xf32> -> vector<32x32xf32>
    %c0_3 = arith.constant 0 : index
    %c0_4 = arith.constant 0 : index
    %4 = vector.load %arg3[%c0_3, %c0_4] : memref<1x32xf32, #tpu.memory_space<vmem>>, vector<1x32xf32>
    %5 = vector.broadcast %4 : vector<1x32xf32> to vector<32x32xf32>
    %6 = arith.addf %3, %5 : vector<32x32xf32>
    %cst_5 = arith.constant 0.000000e+00 : f32
    %7 = vector.broadcast %cst_5 : f32 to vector<32x32xf32>
    %8 = arith.subf %7, %6 : vector<32x32xf32>
    %9 = math.exp %8 : vector<32x32xf32>
    %cst_6 = arith.constant 1.000000e+00 : f32
    %10 = vector.broadcast %cst_6 : f32 to vector<32x32xf32>
    %11 = arith.addf %10, %9 : vector<32x32xf32>
    %12 = tpu.reciprocal %11 {approx = true} : vector<32x32xf32> -> vector<32x32xf32>
    %c0_7 = arith.constant 0 : index
    %c0_8 = arith.constant 0 : index
    %13 = vector.load %arg4[%c0_7, %c0_8] : memref<32x32xf32, #tpu.memory_space<vmem>>, vector<32x32xf32>
    tpu.vector_store %arg4[%c0_7, %c0_8], %12 {strides = array<i32>} : memref<32x32xf32, #tpu.memory_space<vmem>>, vector<32x32xf32>,
    return
  }
  func.func @transform_0(%arg0: i32) -> (i32, i32) {
    %c0_i32 = arith.constant 0 : i32
    %c0_i32_0 = arith.constant 0 : i32
    return %arg0, %c0_i32 : i32, i32
  }
  func.func @transform_1(%arg0: i32) -> (i32, i32) {
    %c0_i32 = arith.constant 0 : i32
    %c0_i32_0 = arith.constant 0 : i32
    %c0_i32_1 = arith.constant 0 : i32
    return %c0_i32, %c0_i32_0 : i32, i32
  }
  func.func @transform_2(%arg0: i32) -> (i32, i32) {
    %c0_i32 = arith.constant 0 : i32
    %c0_i32_0 = arith.constant 0 : i32
    %c0_i32_1 = arith.constant 0 : i32
    return %c0_i32, %c0_i32_0 : i32, i32
  }
  func.func @transform_3(%arg0: i32) -> (i32, i32) {
    %c0_i32 = arith.constant 0 : i32
    %c0_i32_0 = arith.constant 0 : i32
    return %arg0, %c0_i32 : i32, i32
  }
}

</mosaic_0001>

<bundles_post_ra>
// kernel: tpu_custom_call.1
= control target key start
LH: loop header
LB: loop body
LE: loop exit
PB: predicated region body
PF: predicated region fallthrough
CT: control target
= control target key end

     0   :  { %s422_s12 = smov 0   ;;  %s461_s0 = inlined_call_operand.vmem [shape: f32[64,32], index: 0, kind: input, shape index: {}]   ;;  %s462_s1 = inlined_call_operand.vmem [shape: bf16[32,32], index: 1, kind: input, shape index: {}]   ;;  %s463_s2 = inlined_call_operand.vmem [shape: f32[1,32], index: 2, kind: input, shape index: {}]   ;;  %s464_s3 = inlined_call_operand.vmem [shape: f32[64,32], index: 3, kind: output, shape index: {}]  }
   0x1 LB: > { %s340_s13 = sadd.s32 4294967295, %s400_s12   ;;  %p344_p0 = scmp.ge.s32.totalorder %s400_s12, 1  ;;  %s400_s12 = sphi %s422_s12, %s13_s12  }
   0x2   : > { %p138_p1 = scmp.lt.s32.totalorder %s400_s12, 3 }
   0x4   : > { %p139_p2 = pnand %p344_p0, %p138_p1 }
   0x5   : > { %s345_s16 = sshll.u32 (!%p139_p2), %s340_s13, 2 }
   0x6   : > { %142 = sbr.rel (%p139_p2) target bundleno = 258 (0x102), region = 32  ;;  %p163_p3 = scmp.lt.s32.totalorder (!%p139_p2), %s345_s16, 7 }
   0xb   : > { %v376_v0 = vld [vmem:[%s462_s1 + $0x8] sm:$0xff]   ;;  %v377_v1 = vld [vmem:[%s462_s1] sm:$0xff]   ;;  %s466_s16 = smov (!%p163_p3, %s345_s16), 7  ;;  %vm204_vm0 = vcmask 261120  }
   0xc   : > { %360 = vmatprep.subr.bf16.mxu0 %v376_v0  ;;  %s346_s19 = sshll.u32 %s466_s16, 3  ;;  %v349_v8 = vld [vmem:[%s463_s2] ss:$0 sm:$0xff] }
   0xd   : > { %361 = vmatpush3.bf16.msra.mxu0 %v376_v0  ;;  %s166_s22 = scalar_lea.vmem %s461_s0, %s346_s19  ;;  %s172_s27 = scalar_lea.vmem %s464_s3, %s346_s19 }
   0xe   : > { %362 = vmatprep.subr.bf16.mxu0 %v377_v1  ;;  %v175_v2 = vld [vmem:[%s166_s22] sm:$0xff]  ;;  %v176_v3 = vld [vmem:[%s166_s22 + $0x8] sm:$0xff]  ;;  %v177_v4 = vld [vmem:[%s166_s22 + $0x10] sm:$0xff] }
   0xf   : > { %v179_v5 = vpack.c.bf16 %v176_v3, %v175_v2  ;;  %v178_v6 = vld [vmem:[%s166_s22 + $0x18] sm:$0xff] }
  0x10   : > { %v180_v7 = vpack.c.bf16 %v178_v6, %v177_v4 }
  0x11   : > { %363 = vmatpush3.bf16.msra.mxu0 %v377_v1  ;;  %364 = vmatprep.mubr.msk.bf16.mxu0 %vm204_vm0, %v179_v5 }
  0x14   : > { %365 = vmatmul.mubr.msk.bf16.vlgmr.msra.gmra.mxu0 %vm204_vm0, %v180_v7 }
  0xd4   : > { %v366_v9 = vpop.f32.mrf.mxu0 }
  0xd5   : > { %v254_v10 = vadd.f32 %v366_v9, %v349_v8 }
  0xd6   : > { %v245_v11 = vpop.f32.mrf.mxu0 }
  0xd7   : > { %v262_v12 = vsub.f32 0.0, %v254_v10  ;;  %v246_v13 = vadd.f32 %v349_v8, %v245_v11 }
  0xd8   : > { %v367_v14 = vpop.f32.mrf.mxu0 }
  0xd9   : > { %v260_v15 = vsub.f32 0.0, %v246_v13  ;;  %v257_v16 = vadd.f32 %v367_v14, %v349_v8  ;;  %v268_v17 = vmul.f32 1.442695, %v262_v12 }
  0xda   : > { %v248_v18 = vpop.f32.mrf.mxu0 }
  0xdb   : > { %v264_v19 = vmul.f32 1.442695, %v260_v15  ;;  %v263_v20 = vsub.f32 0.0, %v257_v16  ;;  %v249_v21 = vadd.f32 %v349_v8, %v248_v18 }
  0xdd   : > { %378 = vpow2.f32 %v264_v19  ;;  %v270_v22 = vmul.f32 1.442695, %v263_v20  ;;  %v261_v23 = vsub.f32 0.0, %v249_v21 }
  0xde   : > { %380 = vpow2.f32 %v268_v17 }
  0xdf   : > { %382 = vpow2.f32 %v270_v22  ;;  %v266_v24 = vmul.f32 1.442695, %v261_v23 }
  0xe1   : > { %384 = vpow2.f32 %v266_v24 }
  0xea   : > { %v379_v25 = vpop.eup %378 }
  0xeb   : > { %v381_v26 = vpop.eup %380  ;;  %v272_v27 = vadd.f32 1.0, %v379_v25 }
  0xec   : > { %v383_v28 = vpop.eup %382  ;;  %v274_v30 = vadd.f32 1.0, %v381_v26 }
  0xed   : > { %386 = vrcp.f32 %v272_v27  ;;  %v275_v31 = vadd.f32 1.0, %v383_v28 }
  0xee   : > { %v385_v29 = vpop.eup %384 }
  0xef   : > { %v273_v32 = vadd.f32 1.0, %v385_v29 }
  0xf1   : > { %388 = vrcp.f32 %v273_v32 }
  0xf2   : > { %390 = vrcp.f32 %v274_v30 }
  0xf3   : > { %392 = vrcp.f32 %v275_v31 }
  0xfa   : > { %v387_v33 = vpop.eup %386 }
  0xfb   : > { %280 = vst.msk [vmem:[%s172_s27] sm:$0xff] %vm204_vm0, %v387_v33 }
  0xfe   : > { %v389_v34 = vpop.eup %388 }
  0xff   : > { %v391_v35 = vpop.eup %390  ;;  %281 = vst.msk [vmem:[%s172_s27 + $0x8] sm:$0xff] %vm204_vm0, %v389_v34 }
 0x100   : > { %v393_v36 = vpop.eup %392  ;;  %282 = vst.msk [vmem:[%s172_s27 + $0x10] sm:$0xff] %vm204_vm0, %v391_v35 }
 0x101   : > { %283 = vst.msk [vmem:[%s172_s27 + $0x18] sm:$0xff] %vm204_vm0, %v393_v36 }
 0x102 PF: > { %s13_s12 = sadd.s32 1, %s400_s12  }
 0x103   : > { %p10_p4 = scmp.ge.s32.totalorder %s13_s12, 4  }
 0x105   :  { %12 = sbr.rel (!%p10_p4) target bundleno = 1 (0x1), region = 62 }

</bundles_post_ra>
